<compile_context>
chip_gen: v6e
topology: v6e:2x2x1
jax: 0.10.0
libtpu: 0.0.40
codegen_flags: <defaults>
</compile_context>

<pallas_src>
import jax
import jax.numpy as jnp
from jax import lax
from jax.experimental import pallas as pl
from jax.experimental.pallas import tpu as pltpu


def _static_ln_kernel(x_ref, o_ref):
    """Normalize each row to mean 0 / unbiased std 1; std==0 rows use std=1."""
    x = x_ref[...].astype(jnp.float32)          # in-kernel upcast, hidden under DMA
    d = x.shape[-1]
    mean = jnp.mean(x, axis=-1, keepdims=True)
    centered = x - mean
    # torch.Tensor.std defaults to the unbiased estimator (divide by N-1).
    # (D == 1 would be NaN in torch; here it clamps to denom=1 -> output 0.)
    inv_denom = 1.0 / max(d - 1, 1)
    var = jnp.sum(centered * centered, axis=-1, keepdims=True) * inv_denom
    # Per-row reciprocal sqrt on the (tile_rows, 1) column; std==0 <=> var==0.
    rinv = jnp.where(var == 0.0, 1.0, lax.rsqrt(var))
    # Recompute (x - mean) here so the full-tile f32 `centered` temp does not
    # stay live across the cross-lane reduction (frees VMEM for bigger tiles).
    o_ref[...] = ((x - mean) * rinv).astype(o_ref.dtype)


def _vmem_capacity_bytes():
    """Physical VMEM per core; conservative v7x-sized fallback if unqueryable."""
    try:
        cap = getattr(pltpu.get_tpu_info(), "vmem_capacity_bytes", None)
        if cap:
            return int(cap)
    except Exception:
        pass
    return 64 * 1024 * 1024  # v7x floor; safe (conservative) on v5e/v6e too


def static_layer_norm(x, *, target_block_bytes=8 * 1024 * 1024):
    """StaticLayerNorm forward for a [batch, seq, d_model] tensor (dim=2 norm)."""
    assert x.ndim == 3, "expects [batch, seq, d_model]"
    B, S, D = x.shape
    rows = B * S
    x2d = x.reshape(rows, D)  # contiguous reshape; no extra HBM traffic

    itemsize = jnp.dtype(x.dtype).itemsize
    row_bytes = D * itemsize

    # ~75% of physical VMEM as the compiler limit (headroom for internal
    # scratch); block sizing leaves a further 8 MiB of slack under that.
    vmem_limit = max(48 * 1024 * 1024, (_vmem_capacity_bytes() * 3) // 4)
    budget = vmem_limit - 8 * 1024 * 1024
    # Per tile-row VMEM cost: double-buffered native in + out blocks, plus
    # roughly two full-tile f32 temps inside the kernel body.
    vmem_per_row = 4 * row_bytes + 2 * D * 4

    tile_rows = int(min(target_block_bytes // row_bytes, budget // vmem_per_row))
    tile_rows = max(32, tile_rows)
    if rows >= 4 * 32:
        # Keep at least ~4 grid steps so megacore sharding (v7x) and the
        # software pipeline have work to overlap.
        tile_rows = min(tile_rows, max(32, (rows // 4) // 32 * 32))
    if tile_rows >= rows:
        # Single block covering the whole slab: block dims == array dims,
        # legal for any rows / D.
        tile_rows = rows
    else:
        # Multiple of 32 rows: relayout-free for f32 / bf16 / int8 packing.
        tile_rows = max(32, (tile_rows // 32) * 32)

    grid = (pl.cdiv(rows, tile_rows),)

    out2d = pl.pallas_call(
        _static_ln_kernel,
        out_shape=jax.ShapeDtypeStruct((rows, D), x.dtype),
        grid_spec=pltpu.PrefetchScalarGridSpec(
            num_scalar_prefetch=0,
            grid=grid,
            # Last dim is the full d_model (satisfies the (8,128) rule for any
            # D); rows tile is a multiple of 32 or the full row count.
            in_specs=[pl.BlockSpec((tile_rows, D), lambda i: (i, 0))],
            out_specs=pl.BlockSpec((tile_rows, D), lambda i: (i, 0)),
        ),
        compiler_params=pltpu.CompilerParams(
            # Row-tiles are independent: shard across TensorCores on v7x.
            dimension_semantics=("parallel",),
            vmem_limit_bytes=int(vmem_limit),
        ),
    )(x2d)
    return out2d.reshape(B, S, D)


if __name__ == "__main__":
    key = jax.random.PRNGKey(0)
    B, S, D = 2, 8, 32  # batch=2, seq=8, hidden=32
    x = jax.random.normal(key, (B, S, D), dtype=jnp.float32)
    # Exercise the std == 0 branch: one token with constant values.
    x = x.at[0, 0, :].set(3.0)

    out = static_layer_norm(x)
    jax.block_until_ready(out)

    # Pure-JAX reference of the PyTorch semantics.
    mean = x.mean(axis=2, keepdims=True)
    centered = x - mean
    var = jnp.sum(centered**2, axis=2, keepdims=True) / (D - 1)
    std = jnp.sqrt(var)
    std = jnp.where(std == 0.0, 1.0, std)
    ref = centered / std

    assert out.shape == x.shape and out.dtype == x.dtype
    assert jnp.allclose(out, ref, rtol=1e-5, atol=1e-5), float(
        jnp.max(jnp.abs(out - ref))
    )

    print("KERNEL_OK")
</pallas_src>

<mosaic_0001>
module attributes {stable_mosaic.version = 11 : i64} {
  func.func @_static_ln_kernel(%arg0: i32, %arg1: memref<16x32xf32, #tpu.memory_space<vmem>>, %arg2: memref<16x32xf32, #tpu.memory_space<vmem>>) attributes {dimension_semantics = [#tpu.dimension_semantics<parallel>], iteration_bounds = array<i64: 1>, scalar_prefetch = 0 : i64, scratch_operands = 0 : i64, tpu.core_type = #tpu.core_type<tc>, window_params = [{transform_indices = @transform_0, window_bounds = array<i64: 16, 32>}, {transform_indices = @transform_1, window_bounds = array<i64: 16, 32>}]} {
    %c0 = arith.constant 0 : index
    %c0_0 = arith.constant 0 : index
    %0 = vector.load %arg1[%c0, %c0_0] : memref<16x32xf32, #tpu.memory_space<vmem>>, vector<16x32xf32>
    %cst = arith.constant dense<0.000000e+00> : vector<16xf32>
    %1 = vector.multi_reduction <add>, %0, %cst [1] : vector<16x32xf32> to vector<16xf32>
    %2 = vector.shape_cast %1 : vector<16xf32> to vector<16x1xf32>
    %cst_1 = arith.constant 3.200000e+01 : f32
    %3 = vector.broadcast %cst_1 : f32 to vector<16x1xf32>
    %4 = arith.divf %2, %3 : vector<16x1xf32>
    %5 = vector.broadcast %4 : vector<16x1xf32> to vector<16x32xf32>
    %6 = arith.subf %0, %5 : vector<16x32xf32>
    %7 = arith.mulf %6, %6 : vector<16x32xf32>
    %cst_2 = arith.constant dense<0.000000e+00> : vector<16xf32>
    %8 = vector.multi_reduction <add>, %7, %cst_2 [1] : vector<16x32xf32> to vector<16xf32>
    %9 = vector.shape_cast %8 : vector<16xf32> to vector<16x1xf32>
    %cst_3 = arith.constant 0.0322580636 : f32
    %10 = vector.broadcast %cst_3 : f32 to vector<16x1xf32>
    %11 = arith.mulf %9, %10 : vector<16x1xf32>
    %cst_4 = arith.constant 0.000000e+00 : f32
    %12 = vector.broadcast %cst_4 : f32 to vector<16x1xf32>
    %13 = arith.cmpf oeq, %11, %12 : vector<16x1xf32>
    %14 = math.rsqrt %11 : vector<16x1xf32>
    %cst_5 = arith.constant 1.000000e+00 : f32
    %15 = vector.broadcast %cst_5 : f32 to vector<16x1xf32>
    %16 = arith.select %13, %15, %14 : vector<16x1xi1>, vector<16x1xf32>
    %17 = vector.broadcast %4 : vector<16x1xf32> to vector<16x32xf32>
    %18 = arith.subf %0, %17 : vector<16x32xf32>
    %19 = vector.broadcast %16 : vector<16x1xf32> to vector<16x32xf32>
    %20 = arith.mulf %18, %19 : vector<16x32xf32>
    %c0_6 = arith.constant 0 : index
    %c0_7 = arith.constant 0 : index
    %21 = vector.load %arg2[%c0_6, %c0_7] : memref<16x32xf32, #tpu.memory_space<vmem>>, vector<16x32xf32>
    tpu.vector_store %arg2[%c0_6, %c0_7], %20 {strides = array<i32>} : memref<16x32xf32, #tpu.memory_space<vmem>>, vector<16x32xf32>,
    return
  }
  func.func @transform_0(%arg0: i32) -> (i32, i32) {
    %c0_i32 = arith.constant 0 : i32
    %c0_i32_0 = arith.constant 0 : i32
    return %arg0, %c0_i32 : i32, i32
  }
  func.func @transform_1(%arg0: i32) -> (i32, i32) {
    %c0_i32 = arith.constant 0 : i32
    %c0_i32_0 = arith.constant 0 : i32
    return %arg0, %c0_i32 : i32, i32
  }
}

</mosaic_0001>

<bundles_post_ra>
// kernel: tpu_custom_call.1
= control target key start
LH: loop header
LB: loop body
LE: loop exit
PB: predicated region body
PF: predicated region fallthrough
CT: control target
= control target key end

     0   :  { %6 = vsyncpa [#allocation3], 0  ;;  %s158_s0 = inlined_call_operand.hbm [shape: f32[16,32], index: 0, kind: input, shape index: {}]   ;;  %s159_s1 = inlined_call_operand.hbm [shape: f32[16,32], index: 1, kind: output, shape index: {}]  }
   0x1   :  { %7 = vsyncpa [#allocation4], 0  ;;  %s126_s6 = smov [#allocation2]  }
   0x2   :  { %s13_s7 = sshll.u32 %s126_s6, 4  ;;  %s14_s7 = int_to_ptr.vmem [resolvable:$true] %s13_s7 }
   0x3   :  { %s90_s8 = scalar_lea.vmem %s14_s7, 256  ;;  %p95_p1 = scmp.lt.s32.totalorder %s14_s7, %s14_s7 }
   0x4   :  { %p91_p0 = scmp.ne.s32.totalorder %s14_s7, %s90_s8  ;;  %p96_p2 = scmp.lt.s32.totalorder %s90_s8, %s90_s8 }
   0x6   :  { %p97_p3 = por %p96_p2, %p95_p1 }
   0x8   :  { %p98_p4 = pnand %p97_p3, %p91_p0 }
   0xa   :  { %101 = shalt.err (!%p98_p4)
}
   0xb   :  { %s127_s9 = smov 128   ;;  %s128_s10 = smov 8  }
   0xc   :  { %19 = dma.hbm_to_vmem [thread:$0]  %s158_s0, 256, %s14_s7, [#allocation3], %s127_s9, %s127_s9, %s128_s10  }
   0xd   :  { %122 = dma.done.wait [#allocation3], 256  }
   0xe   :  { %123 = vsyncadd [#allocation3], 4294967040  ;;  %vm25_vm0 = vcmask 261120   ;;  %v23_v0 = vld [vmem:[#allocation2] sm:$0xff]  ;;  %v24_v1 = vld [vmem:[#allocation2 + $0x8] sm:$0xff]  ;;  %s129_s0 = smov [#allocation5]  }
   0xf   :  { %v26_v2 = vsel %vm25_vm0, %v23_v0, 0.0  ;;  %v29_v3 = vsel %vm25_vm0, %v24_v1, 0.0  ;;  %s62_s13 = sshll.u32 %s129_s0, 4  ;;  %s63_s13 = int_to_ptr.vmem [resolvable:$true] %s62_s13 }
  0x10   :  { %27 = vadd.xlane.f32.xlu0 %v26_v2  ;;  %s102_s14 = scalar_lea.vmem %s63_s13, 256  ;;  %p107_p6 = scmp.lt.s32.totalorder %s63_s13, %s63_s13 }
  0x11   :  { %p103_p5 = scmp.ne.s32.totalorder %s63_s13, %s102_s14  ;;  %p108_p7 = scmp.lt.s32.totalorder %s102_s14, %s102_s14 }
  0x13   :  { %p109_p8 = por %p108_p7, %p107_p6 }
  0x14   :  { %30 = vadd.xlane.f32.xlu0 %v29_v3 }
  0x15   :  { %p110_p9 = pnand %p109_p8, %p103_p5 }
  0x99   :  { %v28_v4 = vpop.xlane.xlu0 %27 }
  0x9a   :  { %v33_v5 = vmul.f32 0.03125, %v28_v4 }
  0x9c   :  { %v35_v6 = vsub.f32 %v23_v0, %v33_v5 }
  0x9d   :  { %v31_v7 = vpop.xlane.xlu0 %30 }
  0x9e   :  { %v34_v8 = vmul.f32 0.03125, %v31_v7  ;;  %v37_v9 = vmul.f32 %v35_v6, %v35_v6 }
  0xa0   :  { %v36_v10 = vsub.f32 %v24_v1, %v34_v8  ;;  %v39_v11 = vsel %vm25_vm0, %v37_v9, 0.0 }
  0xa1   :  { %40 = vadd.xlane.f32.xlu1 %v39_v11 }
  0xa2   :  { %v38_v12 = vmul.f32 %v36_v10, %v36_v10 }
  0xa4   :  { %v42_v13 = vsel %vm25_vm0, %v38_v12, 0.0 }
  0xa5   :  { %43 = vadd.xlane.f32.xlu1 %v42_v13 }
 0x12a   :  { %v41_v14 = vpop.xlane.xlu1 %40 }
 0x12b   :  { %v45_v15 = vmul.f32 0.032258064, %v41_v14 }
 0x12d   :  { %78 = vrsqrt.f32 %v45_v15  ;;  %vm47_vm1 = vcmp.eq.f32.partialorder %v45_v15, 0.0 }
 0x12e   :  { %v44_v16 = vpop.xlane.xlu1 %43 }
 0x12f   :  { %v46_v17 = vmul.f32 0.032258064, %v44_v16 }
 0x131   :  { %80 = vrsqrt.f32 %v46_v17  ;;  %vm48_vm2 = vcmp.eq.f32.partialorder %v46_v17, 0.0 }
 0x13a   :  { %v79_v18 = vpop.eup %78 }
 0x13b   :  { %v51_v19 = vsel %vm47_vm1, 1.0, %v79_v18 }
 0x13c   :  { %v53_v20 = vmul.f32 %v51_v19, %v35_v6 }
 0x13e   :  { %v81_v21 = vpop.eup %80  ;;  %55 = vst.msk [vmem:[#allocation5] sm:$0xff] %vm25_vm0, %v53_v20 }
 0x13f   :  { %v52_v22 = vsel %vm48_vm2, 1.0, %v81_v21 }
 0x140   :  { %v54_v23 = vmul.f32 %v52_v22, %v36_v10 }
 0x142   :  { %56 = vst.msk [vmem:[#allocation5 + $0x8] sm:$0xff] %vm25_vm0, %v54_v23 }
 0x143   :  { %113 = shalt.err (!%p110_p9)
}
 0x144   :  { %68 = dma.vmem_to_hbm [thread:$0]  %s63_s13, 256, %s159_s1, [#allocation4], %s127_s9, %s127_s9, %s128_s10  }
 0x145   :  { %124 = dma.done.wait [#allocation4], 256  }
 0x146   :  { %125 = vsyncadd [#allocation4], 4294967040 }
 0x147   :  { %72 = vsyncpa [#allocation3], 1 }
 0x148   :  { %73 = vsyncpa [#allocation4], 1 }

</bundles_post_ra>
